<compile_context>
chip_gen: v6e
topology: v6e:2x2x1
jax: 0.10.0
libtpu: 0.0.40
codegen_flags: <defaults>
</compile_context>

<pallas_src>
import functools

import jax
import jax.numpy as jnp
from jax.experimental import pallas as pl
from jax.experimental.pallas import tpu as pltpu

_OUT_PAD = 128  # lane-dense padded width of the final layer


def _round_up(x, m):
    return ((x + m - 1) // m) * m


def _dnn_kernel(x_ref, w0_ref, b0_ref, wh_ref, bh_ref, wl_ref, bl_ref, o_ref):
    # Hoisted bias loads (one per tile).
    b0 = b0_ref[...]          # (1, N)   f32
    bl = bl_ref[...]          # (1, 128) f32 (zero-padded past column 0)

    # First layer: Linear(F, N) + ReLU.  bf16 operands into the MXU, f32 accumulate.
    xb = x_ref[...].astype(jnp.bfloat16)
    h = jnp.dot(xb, w0_ref[...], preferred_element_type=jnp.float32)
    h = jnp.maximum(h + b0, 0.0)

    # Hidden layers: Linear(N, N) + ReLU (+ Dropout == identity in eval mode).
    # Static unrolled Python loop (n_hidden is a compile-time constant).
    n_hidden = wh_ref.shape[0]
    for l in range(n_hidden):
        h = jnp.dot(h.astype(jnp.bfloat16), wh_ref[l],
                    preferred_element_type=jnp.float32)
        h = jnp.maximum(h + bh_ref[l], 0.0)

    # Output layer: Linear(N, 1) padded to 128 lane-dense columns (column 0 is real).
    out = jnp.dot(h.astype(jnp.bfloat16), wl_ref[...],
                  preferred_element_type=jnp.float32) + bl
    o_ref[...] = out.astype(o_ref.dtype)


def basic_dnn_forward(x, p, a, params, *, tile_batch=512):
    """Pallas forward pass. `p` and `a` are accepted for API parity and ignored."""
    del p, a
    w0, b0, wh, bh, wl_pad, bl_pad = params
    batch, feat = x.shape
    nodes = w0.shape[1]
    layers = wh.shape[0]
    out_pad = wl_pad.shape[1]

    # Batch tile: multiple of 8 sublanes; cap at tile_batch for large batches.
    tb = _round_up(min(tile_batch, _round_up(batch, 8)), 8)
    padded_batch = _round_up(batch, tb)
    if padded_batch != batch:
        x = jnp.pad(x, ((0, padded_batch - batch), (0, 0)))

    grid = (padded_batch // tb,)

    flops = 2 * padded_batch * (feat * nodes + layers * nodes * nodes + nodes * out_pad)
    bytes_accessed = (
        padded_batch * feat * 4
        + sum(int(t.size) * t.dtype.itemsize for t in (w0, b0, wh, bh, wl_pad, bl_pad))
        + padded_batch * out_pad * 4
    )

    out = pl.pallas_call(
        _dnn_kernel,
        out_shape=jax.ShapeDtypeStruct((padded_batch, out_pad), jnp.float32),
        grid=grid,
        in_specs=[
            # Batch-tiled input: pipelined / double-buffered across grid steps.
            pl.BlockSpec((tb, feat), lambda i: (i, 0)),
            # Weights & biases: constant index maps -> VMEM-resident across the loop.
            pl.BlockSpec((feat, nodes), lambda i: (0, 0)),
            pl.BlockSpec((1, nodes), lambda i: (0, 0)),
            pl.BlockSpec((layers, nodes, nodes), lambda i: (0, 0, 0)),
            pl.BlockSpec((layers, 1, nodes), lambda i: (0, 0, 0)),
            pl.BlockSpec((nodes, out_pad), lambda i: (0, 0)),
            pl.BlockSpec((1, out_pad), lambda i: (0, 0)),
        ],
        out_specs=pl.BlockSpec((tb, out_pad), lambda i: (i, 0)),
        compiler_params=pltpu.CompilerParams(
            # Batch tiles are independent -> megacore sharding on v7x (harmless on v5e/v6e).
            dimension_semantics=("parallel",),
            # Fits comfortably within v7x's 64 MiB VMEM while raising the scoped default.
            vmem_limit_bytes=48 * 1024 * 1024,
        ),
        cost_estimate=pl.CostEstimate(
            flops=flops, transcendentals=0, bytes_accessed=bytes_accessed
        ),
    )(x, w0, b0, wh, bh, wl_pad, bl_pad)

    # Lane-dense output: only column 0 carries the Linear(N, 1) result.
    return out[:batch, 0:1]


def init_params(key, input_features, layers, nodes):
    """Deterministic synthetic parameters.

    Weight matrices are stored as (in, out) in bf16 for direct x @ W on the MXU;
    biases stay f32. The final Linear(N, 1) is zero-padded to (N, 128) / (1, 128)
    so the kernel output is lane-dense.
    """
    keys = jax.random.split(key, 2 * (layers + 2))
    scale = 0.1

    # Linear(inputFeatures, nodes)
    w0 = (scale * jax.random.normal(keys[0], (input_features, nodes), jnp.float32)
          ).astype(jnp.bfloat16)
    b0 = scale * jax.random.normal(keys[1], (1, nodes), jnp.float32)

    # layers x Linear(nodes, nodes), stacked
    wh_list, bh_list = [], []
    for l in range(layers):
        wh_list.append(
            (scale * jax.random.normal(keys[2 + 2 * l], (nodes, nodes), jnp.float32)
             ).astype(jnp.bfloat16))
        bh_list.append(scale * jax.random.normal(keys[3 + 2 * l], (1, nodes), jnp.float32))
    wh = jnp.stack(wh_list, axis=0)          # (layers, nodes, nodes) bf16
    bh = jnp.stack(bh_list, axis=0)          # (layers, 1, nodes)     f32

    # Linear(nodes, 1), zero-padded to 128 output columns (lane-dense store).
    wl = (scale * jax.random.normal(keys[-2], (nodes, 1), jnp.float32)).astype(jnp.bfloat16)
    bl = scale * jax.random.normal(keys[-1], (1, 1), jnp.float32)
    wl_pad = jnp.zeros((nodes, _OUT_PAD), jnp.bfloat16).at[:, 0:1].set(wl)
    bl_pad = jnp.zeros((1, _OUT_PAD), jnp.float32).at[:, 0:1].set(bl)

    return (w0, b0, wh, bh, wl_pad, bl_pad)


def reference_forward(x, params):
    """Plain-JAX reference mirroring the kernel math (bf16 matmul, f32 accumulate)."""
    w0, b0, wh, bh, wl_pad, bl_pad = params
    h = jnp.dot(x.astype(jnp.bfloat16), w0, preferred_element_type=jnp.float32)
    h = jnp.maximum(h + b0, 0.0)
    for l in range(wh.shape[0]):
        h = jnp.dot(h.astype(jnp.bfloat16), wh[l], preferred_element_type=jnp.float32)
        h = jnp.maximum(h + bh[l], 0.0)
    out = jnp.dot(h.astype(jnp.bfloat16), wl_pad, preferred_element_type=jnp.float32) + bl_pad
    return out[:, 0:1]


if __name__ == "__main__":
    # Small configuration consistent with basicDNN(inputFeatures=16, layers=2, nodes=32, pDropout=0.1)
    input_features, layers, nodes = 16, 2, 32
    batch = 8

    key = jax.random.PRNGKey(0)
    k_x, k_p, k_a, k_w = jax.random.split(key, 4)

    x = jax.random.normal(k_x, (batch, input_features), jnp.float32)
    p = jax.random.normal(k_p, (batch, 4), jnp.float32)   # unused by forward (as in PyTorch)
    a = jax.random.normal(k_a, (batch, 4), jnp.float32)   # unused by forward (as in PyTorch)

    params = init_params(k_w, input_features, layers, nodes)

    out = basic_dnn_forward(x, p, a, params)
    out = jax.block_until_ready(out)

    ref = reference_forward(x, params)
    assert out.shape == (batch, 1)
    assert jnp.allclose(out, ref, atol=2e-2, rtol=2e-2), (out, ref)

    print("KERNEL_OK")
</pallas_src>

<mosaic_0001>
module attributes {stable_mosaic.version = 11 : i64} {
  func.func @_dnn_kernel(%arg0: i32, %arg1: memref<8x16xf32, #tpu.memory_space<vmem>>, %arg2: memref<16x32xbf16, #tpu.memory_space<vmem>>, %arg3: memref<1x32xf32, #tpu.memory_space<vmem>>, %arg4: memref<2x32x32xbf16, #tpu.memory_space<vmem>>, %arg5: memref<2x1x32xf32, #tpu.memory_space<vmem>>, %arg6: memref<32x128xbf16, #tpu.memory_space<vmem>>, %arg7: memref<1x128xf32, #tpu.memory_space<vmem>>, %arg8: memref<8x128xf32, #tpu.memory_space<vmem>>) attributes {dimension_semantics = [#tpu.dimension_semantics<parallel>], iteration_bounds = array<i64: 1>, scalar_prefetch = 0 : i64, scratch_operands = 0 : i64, tpu.core_type = #tpu.core_type<tc>, window_params = [{transform_indices = @transform_0, window_bounds = array<i64: 8, 16>}, {pipeline_mode = #tpu.pipeline_mode<synchronous>, transform_indices = @transform_1, window_bounds = array<i64: 16, 32>}, {pipeline_mode = #tpu.pipeline_mode<synchronous>, transform_indices = @transform_2, window_bounds = array<i64: 1, 32>}, {pipeline_mode = #tpu.pipeline_mode<synchronous>, transform_indices = @transform_3, window_bounds = array<i64: 2, 32, 32>}, {pipeline_mode = #tpu.pipeline_mode<synchronous>, transform_indices = @transform_4, window_bounds = array<i64: 2, 1, 32>}, {pipeline_mode = #tpu.pipeline_mode<synchronous>, transform_indices = @transform_5, window_bounds = array<i64: 32, 128>}, {pipeline_mode = #tpu.pipeline_mode<synchronous>, transform_indices = @transform_6, window_bounds = array<i64: 1, 128>}, {transform_indices = @transform_7, window_bounds = array<i64: 8, 128>}]} {
    %c0 = arith.constant 0 : index
    %c0_0 = arith.constant 0 : index
    %0 = vector.load %arg3[%c0, %c0_0] : memref<1x32xf32, #tpu.memory_space<vmem>>, vector<1x32xf32>
    %c0_1 = arith.constant 0 : index
    %c0_2 = arith.constant 0 : index
    %1 = vector.load %arg7[%c0_1, %c0_2] : memref<1x128xf32, #tpu.memory_space<vmem>>, vector<1x128xf32>
    %c0_3 = arith.constant 0 : index
    %c0_4 = arith.constant 0 : index
    %2 = vector.load %arg1[%c0_3, %c0_4] : memref<8x16xf32, #tpu.memory_space<vmem>>, vector<8x16xf32>
    %3 = arith.truncf %2 : vector<8x16xf32> to vector<8x16xbf16>
    %c0_5 = arith.constant 0 : index
    %c0_6 = arith.constant 0 : index
    %4 = vector.load %arg2[%c0_5, %c0_6] : memref<16x32xbf16, #tpu.memory_space<vmem>>, vector<16x32xbf16>
    %cst = arith.constant dense<0.000000e+00> : vector<8x32xf32>
    %5 = tpu.matmul %3, %4, %cst {dimension_numbers = #tpu.dot_dimension_numbers<[1], [0], [0], [1], [0, 0, 1, 1], [], []>} : vector<8x16xbf16>, vector<16x32xbf16>, vector<8x32xf32> -> vector<8x32xf32>
    %6 = vector.broadcast %0 : vector<1x32xf32> to vector<8x32xf32>
    %7 = arith.addf %5, %6 : vector<8x32xf32>
    %cst_7 = arith.constant 0.000000e+00 : f32
    %8 = vector.broadcast %cst_7 : f32 to vector<8x32xf32>
    %9 = arith.maximumf %7, %8 : vector<8x32xf32>
    %10 = arith.truncf %9 : vector<8x32xf32> to vector<8x32xbf16>
    %c0_8 = arith.constant 0 : index
    %c0_9 = arith.constant 0 : index
    %c0_10 = arith.constant 0 : index
    %11 = vector.load %arg4[%c0_8, %c0_9, %c0_10] : memref<2x32x32xbf16, #tpu.memory_space<vmem>>, vector<1x32x32xbf16>
    %12 = vector.shape_cast %11 : vector<1x32x32xbf16> to vector<32x32xbf16>
    %cst_11 = arith.constant dense<0.000000e+00> : vector<8x32xf32>
    %13 = tpu.matmul %10, %12, %cst_11 {dimension_numbers = #tpu.dot_dimension_numbers<[1], [0], [0], [1], [0, 0, 1, 1], [], []>} : vector<8x32xbf16>, vector<32x32xbf16>, vector<8x32xf32> -> vector<8x32xf32>
    %c0_12 = arith.constant 0 : index
    %c0_13 = arith.constant 0 : index
    %c0_14 = arith.constant 0 : index
    %14 = vector.load %arg5[%c0_12, %c0_13, %c0_14] : memref<2x1x32xf32, #tpu.memory_space<vmem>>, vector<1x1x32xf32>
    %15 = vector.shape_cast %14 : vector<1x1x32xf32> to vector<1x32xf32>
    %16 = vector.broadcast %15 : vector<1x32xf32> to vector<8x32xf32>
    %17 = arith.addf %13, %16 : vector<8x32xf32>
    %cst_15 = arith.constant 0.000000e+00 : f32
    %18 = vector.broadcast %cst_15 : f32 to vector<8x32xf32>
    %19 = arith.maximumf %17, %18 : vector<8x32xf32>
    %20 = arith.truncf %19 : vector<8x32xf32> to vector<8x32xbf16>
    %c1 = arith.constant 1 : index
    %c0_16 = arith.constant 0 : index
    %c0_17 = arith.constant 0 : index
    %21 = vector.load %arg4[%c1, %c0_16, %c0_17] : memref<2x32x32xbf16, #tpu.memory_space<vmem>>, vector<1x32x32xbf16>
    %22 = vector.shape_cast %21 : vector<1x32x32xbf16> to vector<32x32xbf16>
    %cst_18 = arith.constant dense<0.000000e+00> : vector<8x32xf32>
    %23 = tpu.matmul %20, %22, %cst_18 {dimension_numbers = #tpu.dot_dimension_numbers<[1], [0], [0], [1], [0, 0, 1, 1], [], []>} : vector<8x32xbf16>, vector<32x32xbf16>, vector<8x32xf32> -> vector<8x32xf32>
    %c1_19 = arith.constant 1 : index
    %c0_20 = arith.constant 0 : index
    %c0_21 = arith.constant 0 : index
    %24 = vector.load %arg5[%c1_19, %c0_20, %c0_21] : memref<2x1x32xf32, #tpu.memory_space<vmem>>, vector<1x1x32xf32>
    %25 = vector.shape_cast %24 : vector<1x1x32xf32> to vector<1x32xf32>
    %26 = vector.broadcast %25 : vector<1x32xf32> to vector<8x32xf32>
    %27 = arith.addf %23, %26 : vector<8x32xf32>
    %cst_22 = arith.constant 0.000000e+00 : f32
    %28 = vector.broadcast %cst_22 : f32 to vector<8x32xf32>
    %29 = arith.maximumf %27, %28 : vector<8x32xf32>
    %30 = arith.truncf %29 : vector<8x32xf32> to vector<8x32xbf16>
    %c0_23 = arith.constant 0 : index
    %c0_24 = arith.constant 0 : index
    %31 = vector.load %arg6[%c0_23, %c0_24] : memref<32x128xbf16, #tpu.memory_space<vmem>>, vector<32x128xbf16>
    %cst_25 = arith.constant dense<0.000000e+00> : vector<8x128xf32>
    %32 = tpu.matmul %30, %31, %cst_25 {dimension_numbers = #tpu.dot_dimension_numbers<[1], [0], [0], [1], [0, 0, 1, 1], [], []>} : vector<8x32xbf16>, vector<32x128xbf16>, vector<8x128xf32> -> vector<8x128xf32>
    %33 = vector.broadcast %1 : vector<1x128xf32> to vector<8x128xf32>
    %34 = arith.addf %32, %33 : vector<8x128xf32>
    %c0_26 = arith.constant 0 : index
    %c0_27 = arith.constant 0 : index
    %35 = vector.load %arg8[%c0_26, %c0_27] : memref<8x128xf32, #tpu.memory_space<vmem>>, vector<8x128xf32>
    tpu.vector_store %arg8[%c0_26, %c0_27], %34 {strides = array<i32>} : memref<8x128xf32, #tpu.memory_space<vmem>>, vector<8x128xf32>,
    return
  }
  func.func @transform_0(%arg0: i32) -> (i32, i32) {
    %c0_i32 = arith.constant 0 : i32
    %c0_i32_0 = arith.constant 0 : i32
    return %arg0, %c0_i32 : i32, i32
  }
  func.func @transform_1(%arg0: i32) -> (i32, i32) {
    %c0_i32 = arith.constant 0 : i32
    %c0_i32_0 = arith.constant 0 : i32
    %c0_i32_1 = arith.constant 0 : i32
    return %c0_i32, %c0_i32_0 : i32, i32
  }
  func.func @transform_2(%arg0: i32) -> (i32, i32) {
    %c0_i32 = arith.constant 0 : i32
    %c0_i32_0 = arith.constant 0 : i32
    %c0_i32_1 = arith.constant 0 : i32
    return %c0_i32, %c0_i32_0 : i32, i32
  }
  func.func @transform_3(%arg0: i32) -> (i32, i32, i32) {
    %c0_i32 = arith.constant 0 : i32
    %c0_i32_0 = arith.constant 0 : i32
    %c0_i32_1 = arith.constant 0 : i32
    %c0_i32_2 = arith.constant 0 : i32
    return %c0_i32, %c0_i32_0, %c0_i32_1 : i32, i32, i32
  }
  func.func @transform_4(%arg0: i32) -> (i32, i32, i32) {
    %c0_i32 = arith.constant 0 : i32
    %c0_i32_0 = arith.constant 0 : i32
    %c0_i32_1 = arith.constant 0 : i32
    %c0_i32_2 = arith.constant 0 : i32
    return %c0_i32, %c0_i32_0, %c0_i32_1 : i32, i32, i32
  }
  func.func @transform_5(%arg0: i32) -> (i32, i32) {
    %c0_i32 = arith.constant 0 : i32
    %c0_i32_0 = arith.constant 0 : i32
    %c0_i32_1 = arith.constant 0 : i32
    return %c0_i32, %c0_i32_0 : i32, i32
  }
  func.func @transform_6(%arg0: i32) -> (i32, i32) {
    %c0_i32 = arith.constant 0 : i32
    %c0_i32_0 = arith.constant 0 : i32
    %c0_i32_1 = arith.constant 0 : i32
    return %c0_i32, %c0_i32_0 : i32, i32
  }
  func.func @transform_7(%arg0: i32) -> (i32, i32) {
    %c0_i32 = arith.constant 0 : i32
    %c0_i32_0 = arith.constant 0 : i32
    return %arg0, %c0_i32 : i32, i32
  }
}

</mosaic_0001>

<bundles_post_ra>
// kernel: tpu_custom_call.1
= control target key start
LH: loop header
LB: loop body
LE: loop exit
PB: predicated region body
PF: predicated region fallthrough
CT: control target
= control target key end

     0   :  { %12 = vsyncpa [#allocation3], 0  ;;  %s640_s0 = inlined_call_operand.hbm [shape: f32[8,16], index: 0, kind: input, shape index: {}]   ;;  %s641_s1 = inlined_call_operand.hbm [shape: bf16[16,32], index: 1, kind: input, shape index: {}]   ;;  %s642_s2 = inlined_call_operand.vmem [shape: f32[1,32], index: 2, kind: input, shape index: {}]   ;;  %s643_s3 = inlined_call_operand.hbm [shape: bf16[2,32,32], index: 3, kind: input, shape index: {}]   ;;  %s644_s4 = inlined_call_operand.vmem [shape: f32[2,1,32], index: 4, kind: input, shape index: {}]   ;;  %s645_s5 = inlined_call_operand.hbm [shape: bf16[32,128], index: 5, kind: input, shape index: {}]   ;;  %s646_s6 = inlined_call_operand.vmem [shape: f32[1,128], index: 6, kind: input, shape index: {}]   ;;  %s647_s7 = inlined_call_operand.hbm [shape: f32[8,128], index: 7, kind: output, shape index: {}]  }
   0x1   :  { %13 = vsyncpa [#allocation6], 0 }
   0x2   :  { %14 = vsyncpa [#allocation9], 0 }
   0x3   :  { %15 = vsyncpa [#allocation4], 0  ;;  %s548_s24 = smov [#allocation5]  }
   0x4   :  { %s31_s25 = sshll.u32 %s548_s24, 4  ;;  %s32_s25 = int_to_ptr.vmem [resolvable:$true] %s31_s25 }
   0x5   :  { %s448_s26 = scalar_lea.vmem %s32_s25, 128  ;;  %p453_p1 = scmp.lt.s32.totalorder %s32_s25, %s32_s25 }
   0x6   :  { %p449_p0 = scmp.ne.s32.totalorder %s32_s25, %s448_s26  ;;  %p454_p2 = scmp.lt.s32.totalorder %s448_s26, %s448_s26 }
   0x8   :  { %p455_p3 = por %p454_p2, %p453_p1 }
   0xa   :  { %p456_p4 = pnand %p455_p3, %p449_p0 }
   0xc   :  { %459 = shalt.err (!%p456_p4)
}
   0xd   :  { %s549_s27 = smov 64   ;;  %s550_s28 = smov 4  }
   0xe   :  { %37 = dma.hbm_to_vmem [thread:$0]  %s641_s1, 128, %s32_s25, [#allocation6], %s549_s27, %s549_s27, %s550_s28  }
   0xf   :  { %s551_s8 = smov [#allocation2]   ;;  %s552_s10 = smov [#allocation7]  }
  0x10   :  { %s22_s9 = sshll.u32 %s551_s8, 4  ;;  %s45_s11 = sshll.u32 %s552_s10, 4  ;;  %s23_s9 = int_to_ptr.vmem [resolvable:$true] %s22_s9  ;;  %s46_s11 = int_to_ptr.vmem [resolvable:$true] %s45_s11 }
  0x11   :  { %s468_s12 = scalar_lea.vmem %s23_s9, 128  ;;  %p473_p6 = scmp.lt.s32.totalorder %s23_s9, %s23_s9 }
  0x12   :  { %p469_p5 = scmp.ne.s32.totalorder %s23_s9, %s468_s12  ;;  %p474_p7 = scmp.lt.s32.totalorder %s468_s12, %s468_s12 }
  0x14   :  { %p475_p8 = por %p474_p7, %p473_p6 }
  0x16   :  { %p476_p9 = pnand %p475_p8, %p469_p5 }
  0x18   :  { %479 = shalt.err (!%p476_p9)
}
  0x19   :  { %25 = dma.hbm_to_vmem [thread:$0]  %s640_s0, 128, %s23_s9, [#allocation3]  }
  0x1a   :  { %s488_s15 = scalar_lea.vmem %s46_s11, 512  ;;  %p493_p11 = scmp.lt.s32.totalorder %s46_s11, %s46_s11 }
  0x1b   :  { %p489_p10 = scmp.ne.s32.totalorder %s46_s11, %s488_s15  ;;  %p494_p12 = scmp.lt.s32.totalorder %s488_s15, %s488_s15 }
  0x1d   :  { %p495_p13 = por %p494_p12, %p493_p11 }
  0x1f   :  { %p496_p0 = pnand %p495_p13, %p489_p10 }
  0x21   :  { %499 = shalt.err (!%p496_p0)
}
  0x22   :  { %51 = dma.hbm_to_vmem [thread:$0]  %s643_s3, 512, %s46_s11, [#allocation6], %s549_s27, %s549_s27, %s550_s28  }
  0x23   :  { %s553_s17 = smov [#allocation8]  }
  0x24   :  { %s59_s18 = sshll.u32 %s553_s17, 4  ;;  %s60_s18 = int_to_ptr.vmem [resolvable:$true] %s59_s18 }
  0x25   :  { %s508_s19 = scalar_lea.vmem %s60_s18, 256  ;;  %p513_p2 = scmp.lt.s32.totalorder %s60_s18, %s60_s18 }
  0x26   :  { %p509_p1 = scmp.ne.s32.totalorder %s60_s18, %s508_s19  ;;  %p514_p3 = scmp.lt.s32.totalorder %s508_s19, %s508_s19 }
  0x28   :  { %p515_p4 = por %p514_p3, %p513_p2 }
  0x2a   :  { %p516_p5 = pnand %p515_p4, %p509_p1 }
  0x2c   :  { %519 = shalt.err (!%p516_p5)
}
  0x2d   :  { %65 = dma.hbm_to_vmem [thread:$0]  %s645_s5, 256, %s60_s18, [#allocation9], %s549_s27, %s549_s27, %s550_s28  }
  0x2e   :  { %540 = dma.done.wait [#allocation3], 128  }
  0x2f   :  { %541 = vsyncadd [#allocation3], 4294967168 }
  0x30   :  { %542 = dma.done.wait [#allocation6], 640  }
  0x31   :  { %543 = vsyncadd [#allocation6], 4294966656 }
  0x32   :  { %544 = dma.done.wait [#allocation9], 256  }
  0x33   :  { %545 = vsyncadd [#allocation9], 4294967040  ;;  %v554_v0 = vmov 0.0   ;;  %vm555_vm0 = vmmov 0   ;;  %v433_v1 = vld [vmem:[#allocation5] sm:$0xff]   ;;  %v83_v2 = vld [vmem:[#allocation2] sm:$0xff] }
  0x34   :  { %394 = vmatprep.subr.bf16.mxu0 %v554_v0  ;;  %396 = vmatprep.mubr.msk.bf16.mxu0 %vm555_vm0, %v554_v0  ;;  %vm99_vm1 = vcmask 130048   ;;  %v84_v3 = vpack.c.bf16 %v83_v2, %v83_v2  ;;  %v434_v4 = vld [vmem:[#allocation7 + $0x8] sm:$0xff]   ;;  %v435_v5 = vld [vmem:[#allocation7] sm:$0xff]   ;;  %v436_v6 = vld [vmem:[#allocation7 + $0x18] sm:$0xff]   ;;  %vm168_vm2 = vcmask 261120   ;;  %s556_s26 = smov [#allocation10]  }
  0x35   :  { %400 = vmatprep.subr.bf16.mxu1 %v554_v0  ;;  %404 = vmatprep.mubr.msk.bf16.mxu1 %vm555_vm0, %v554_v0  ;;  %v367_v7 = vld [vmem:[%s642_s2] ss:$0 sm:$0xff]  ;;  %v438_v16 = vld [vmem:[#allocation8 + $0x8] sm:$0xff]   ;;  %v439_v25 = vld [vmem:[#allocation8] sm:$0xff]   ;;  %s356_s27 = sshll.u32 %s556_s26, 4  ;;  %s357_s27 = int_to_ptr.vmem [resolvable:$true] %s356_s27 }
  0x36   :  { %395 = vmatpush3.bf16.msra.mxu0 %v433_v1  ;;  %401 = vmatpush3.bf16.msra.mxu1 %v434_v4  ;;  %v437_v15 = vld [vmem:[#allocation7 + $0x10] sm:$0xff]   ;;  %p525_p7 = scmp.lt.s32.totalorder %s357_s27, %s357_s27 }
  0x37   :  { %408 = vmatprep.subr.bf16.mxu0 %v554_v0  ;;  %402 = vmatprep.subr.bf16.mxu1 %v554_v0  ;;  %v370_v17 = vld [vmem:[%s644_s4] ss:$0 sm:$0xff]  ;;  %v375_v26 = vld [vmem:[%s644_s4 + $0x1] ss:$0 sm:$0xff]  ;;  %s520_s4 = scalar_lea.vmem %s357_s27, 128 }
  0x38   :  { %v379_v34 = vld [vmem:[%s646_s6] ss:$0 sm:$0xff]  ;;  %p521_p6 = scmp.ne.s32.totalorder %s357_s27, %s520_s4  ;;  %p526_p8 = scmp.lt.s32.totalorder %s520_s4, %s520_s4 }
  0x39   :  { %397 = vmatmul.mubr.msk.bf16.vlgmr.msra.gmra.mxu0 %vm99_vm1, %v84_v3 }
  0x3a   :  { %412 = vmatprep.mubr.msk.bf16.mxu0 %vm555_vm0, %v554_v0  ;;  %403 = vmatpush3.bf16.msra.mxu1 %v435_v5  ;;  %p527_p9 = por %p526_p8, %p525_p7 }
  0x3b   :  { %416 = vmatprep.subr.bf16.mxu1 %v554_v0  ;;  %409 = vmatpush3.bf16.msra.mxu0 %v436_v6 }
  0x3c   :  { %410 = vmatprep.subr.bf16.mxu0 %v554_v0  ;;  %p528_p10 = pnand %p527_p9, %p521_p6 }
  0x3f   :  { %411 = vmatpush3.bf16.msra.mxu0 %v437_v15 }
  0xf9   :  { %v137_v8 = vpop.f32.mrf.mxu0 }
  0xfa   :  { %v138_v9 = vadd.f32 %v367_v7, %v137_v8 }
  0xfb   :  { %v398_v10 = vpop.f32.mrf.mxu0 }
  0xfc   :  { %v143_v11 = vmax.f32 %v138_v9, 0.0 }
  0xfd   :  { %v140_v12 = vpop.f32.mrf.mxu0 }
  0xfe   :  { %v144_v13 = vpack.c.bf16 %v143_v11, %v143_v11 }
  0xff   :  { %v399_v14 = vpop.f32.mrf.mxu0 }
 0x100   :  { %405 = vmatmul.mubr.msk.bf16.vlgmr.msra.gmra.mxu1 %vm168_vm2, %v144_v13 }
 0x101   :  { %420 = vmatprep.mubr.msk.bf16.mxu1 %vm555_vm0, %v554_v0  ;;  %417 = vmatpush3.bf16.msra.mxu1 %v438_v16 }
 0x102   :  { %418 = vmatprep.subr.bf16.mxu1 %v554_v0 }
 0x105   :  { %419 = vmatpush3.bf16.msra.mxu1 %v439_v25 }
 0x1c0   :  { %v206_v18 = vpop.f32.mrf.mxu1 }
 0x1c1   :  { %v207_v19 = vadd.f32 %v370_v17, %v206_v18 }
 0x1c2   :  { %v406_v20 = vpop.f32.mrf.mxu1 }
 0x1c3   :  { %v212_v21 = vmax.f32 %v207_v19, 0.0 }
 0x1c4   :  { %v209_v22 = vpop.f32.mrf.mxu1 }
 0x1c5   :  { %v213_v23 = vpack.c.bf16 %v212_v21, %v212_v21 }
 0x1c6   :  { %v407_v24 = vpop.f32.mrf.mxu1 }
 0x1c7   :  { %413 = vmatmul.mubr.msk.bf16.vlgmr.msra.gmra.mxu0 %vm168_vm2, %v213_v23 }
 0x287   :  { %v276_v27 = vpop.f32.mrf.mxu0 }
 0x288   :  { %v277_v28 = vadd.f32 %v375_v26, %v276_v27 }
 0x289   :  { %v414_v29 = vpop.f32.mrf.mxu0 }
 0x28a   :  { %v282_v30 = vmax.f32 %v277_v28, 0.0 }
 0x28b   :  { %v279_v31 = vpop.f32.mrf.mxu0 }
 0x28c   :  { %v283_v32 = vpack.c.bf16 %v282_v30, %v282_v30 }
 0x28d   :  { %v415_v33 = vpop.f32.mrf.mxu0 }
 0x28e   :  { %421 = vmatmul.mubr.msk.bf16.vlgmr.msra.gmra.mxu1 %vm168_vm2, %v283_v32 }
 0x34e   :  { %v343_v35 = vpop.f32.mrf.mxu1 }
 0x34f   :  { %v344_v36 = vadd.f32 %v379_v34, %v343_v35 }
 0x350   :  { %v422_v37 = vpop.f32.mrf.mxu1 }
 0x351   :  { %349 = vst [vmem:[#allocation10] sm:$0xff] %v344_v36 }
 0x352   :  { %v346_v38 = vpop.f32.mrf.mxu1 }
 0x353   :  { %531 = shalt.err (!%p528_p10)
}
 0x354   :  { %359 = dma.vmem_to_hbm [thread:$0]  %s357_s27, 128, %s647_s7, [#allocation4]   ;;  %v423_v39 = vpop.f32.mrf.mxu1 }
 0x355   :  { %546 = dma.done.wait [#allocation4], 128  }
 0x356   :  { %547 = vsyncadd [#allocation4], 4294967168 }
 0x357   :  { %363 = vsyncpa [#allocation3], 1 }
 0x358   :  { %364 = vsyncpa [#allocation6], 1 }
 0x359   :  { %365 = vsyncpa [#allocation9], 1 }
 0x35a   :  { %366 = vsyncpa [#allocation4], 1 }

</bundles_post_ra>
